<compile_context>
chip_gen: v6e
topology: v6e:2x2x1
jax: 0.10.0
libtpu: 0.0.40
codegen_flags: <defaults>
</compile_context>

<pallas_src>
import math
from functools import partial

import jax
import jax.numpy as jnp
from jax.experimental import pallas as pl
from jax.experimental.pallas import tpu as pltpu

_LANE = 128          # lane width; pad feature dims to this
_NEG_INF = -1e30     # mask value for padded logit columns
_MAX_TILE_B = 256    # batch tile (rows per grid step); small vs VMEM on all gens


def _round_up(n, m):
    return ((n + m - 1) // m) * m


def _pad_to(a, shape, value=0.0):
    pads = [(0, t - s) for s, t in zip(a.shape, shape)]
    return jnp.pad(a, pads, constant_values=value)


def pinn_kernel(x_ref, w0_ref, b0_ref, w1_ref, b1_ref, w2_ref, b2_ref, o_ref):
    # x: (TILE_B, F_pad) bf16; weights bf16; biases f32; accumulate in f32.
    x = x_ref[...]

    # hidden0 + ReLU
    h0 = jnp.dot(x, w0_ref[...], preferred_element_type=jnp.float32) + b0_ref[...]
    h0 = jnp.maximum(h0, 0.0)

    # hidden1 + ReLU
    h1 = jnp.dot(h0.astype(jnp.bfloat16), w1_ref[...],
                 preferred_element_type=jnp.float32) + b1_ref[...]
    h1 = jnp.maximum(h1, 0.0)

    # predict (padded output columns carry a -1e30 bias -> masked out of softmax)
    logits = jnp.dot(h1.astype(jnp.bfloat16), w2_ref[...],
                     preferred_element_type=jnp.float32) + b2_ref[...]

    # numerically stable softmax over last dim; reciprocal routed to the EUP
    m = jnp.max(logits, axis=-1, keepdims=True)
    e = jnp.exp(logits - m)
    s = jnp.sum(e, axis=-1, keepdims=True)
    o_ref[...] = (e * pl.reciprocal(s, approx=True)).astype(o_ref.dtype)


def pinn_forward(x, params, tile_b=_MAX_TILE_B):
    """x: (B, n_feature) f32. params: dict of weights/biases in (in, out) layout."""
    w0, b0, w1, b1, w2, b2 = (
        params["w0"], params["b0"], params["w1"], params["b1"],
        params["w2"], params["b2"],
    )
    B, n_feature = x.shape
    n_hidden = w0.shape[1]
    n_output = w2.shape[1]

    # lane-pad feature dims; pick a batch tile (multiple of 16, capped)
    f_pad = _round_up(n_feature, _LANE)
    h_pad = _round_up(n_hidden, _LANE)
    o_pad = _round_up(n_output, _LANE)
    tile_b = min(tile_b, _round_up(B, 16))
    b_pad = _round_up(B, tile_b)

    # padded / casted operands (all padding is with zeros except the predict
    # bias, whose padded columns get -inf-like values to mask the softmax)
    x_p = _pad_to(x, (b_pad, f_pad)).astype(jnp.bfloat16)
    w0_p = _pad_to(w0, (f_pad, h_pad)).astype(jnp.bfloat16)
    b0_p = _pad_to(b0, (1, h_pad)).astype(jnp.float32)
    w1_p = _pad_to(w1, (h_pad, h_pad)).astype(jnp.bfloat16)
    b1_p = _pad_to(b1, (1, h_pad)).astype(jnp.float32)
    w2_p = _pad_to(w2, (h_pad, o_pad)).astype(jnp.bfloat16)
    b2_p = _pad_to(b2.astype(jnp.float32), (1, o_pad), value=_NEG_INF)

    grid = (b_pad // tile_b,)

    out_padded = pl.pallas_call(
        pinn_kernel,
        out_shape=jax.ShapeDtypeStruct((b_pad, o_pad), jnp.float32),
        grid=grid,
        in_specs=[
            # batch-tiled activations
            pl.BlockSpec((tile_b, f_pad), lambda i: (i, 0)),
            # weights/biases: constant block index -> VMEM-resident across steps
            pl.BlockSpec((f_pad, h_pad), lambda i: (0, 0)),
            pl.BlockSpec((1, h_pad), lambda i: (0, 0)),
            pl.BlockSpec((h_pad, h_pad), lambda i: (0, 0)),
            pl.BlockSpec((1, h_pad), lambda i: (0, 0)),
            pl.BlockSpec((h_pad, o_pad), lambda i: (0, 0)),
            pl.BlockSpec((1, o_pad), lambda i: (0, 0)),
        ],
        out_specs=pl.BlockSpec((tile_b, o_pad), lambda i: (i, 0)),
        compiler_params=pltpu.CompilerParams(
            dimension_semantics=("parallel",)),
    )(x_p, w0_p, b0_p, w1_p, b1_p, w2_p, b2_p)

    return out_padded[:B, :n_output]


def pinn_reference(x, params):
    """Pure-JAX f32 reference for correctness checking."""
    h0 = jnp.maximum(x @ params["w0"] + params["b0"], 0.0)
    h1 = jnp.maximum(h0 @ params["w1"] + params["b1"], 0.0)
    logits = h1 @ params["w2"] + params["b2"]
    return jax.nn.softmax(logits, axis=-1)


def init_pinn_params(key, n_feature, n_hidden, n_output):
    """Deterministic init mimicking torch.nn.Linear (uniform +-1/sqrt(fan_in)).
    Weights stored transposed relative to PyTorch: (in_features, out_features)."""
    ks = jax.random.split(key, 6)

    def linear(kw, kb, fan_in, fan_out):
        bound = 1.0 / math.sqrt(fan_in)
        w = jax.random.uniform(kw, (fan_in, fan_out), jnp.float32, -bound, bound)
        b = jax.random.uniform(kb, (1, fan_out), jnp.float32, -bound, bound)
        return w, b

    w0, b0 = linear(ks[0], ks[1], n_feature, n_hidden)
    w1, b1 = linear(ks[2], ks[3], n_hidden, n_hidden)
    w2, b2 = linear(ks[4], ks[5], n_hidden, n_output)
    return {"w0": w0, "b0": b0, "w1": w1, "b1": b1, "w2": w2, "b2": b2}


if __name__ == "__main__":
    key = jax.random.PRNGKey(0)
    k_x, k_p = jax.random.split(key)

    batch = 8
    n_feature = 16
    n_hidden = 32
    n_output = 4

    x = jax.random.normal(k_x, (batch, n_feature), dtype=jnp.float32)
    params = init_pinn_params(k_p, n_feature, n_hidden, n_output)

    out = jax.jit(pinn_forward)(x, params)
    out = jax.block_until_ready(out)

    ref = pinn_reference(x, params)

    assert out.shape == (batch, n_output)
    # rows sum to 1 (approx reciprocal + bf16 matmul => loose tolerance)
    row_sums = jnp.sum(out, axis=-1)
    assert bool(jnp.all(jnp.abs(row_sums - 1.0) < 1e-2))
    # matches f32 reference within bf16/approx-reciprocal tolerance
    assert bool(jnp.max(jnp.abs(out - ref)) < 3e-2)

    print("KERNEL_OK")
</pallas_src>

<mosaic_0001>
module attributes {stable_mosaic.version = 11 : i64} {
  func.func @pinn_kernel(%arg0: i32, %arg1: memref<16x128xbf16, #tpu.memory_space<vmem>>, %arg2: memref<128x128xbf16, #tpu.memory_space<vmem>>, %arg3: memref<1x128xf32, #tpu.memory_space<vmem>>, %arg4: memref<128x128xbf16, #tpu.memory_space<vmem>>, %arg5: memref<1x128xf32, #tpu.memory_space<vmem>>, %arg6: memref<128x128xbf16, #tpu.memory_space<vmem>>, %arg7: memref<1x128xf32, #tpu.memory_space<vmem>>, %arg8: memref<16x128xf32, #tpu.memory_space<vmem>>) attributes {dimension_semantics = [#tpu.dimension_semantics<parallel>], iteration_bounds = array<i64: 1>, scalar_prefetch = 0 : i64, scratch_operands = 0 : i64, tpu.core_type = #tpu.core_type<tc>, window_params = [{transform_indices = @transform_0, window_bounds = array<i64: 16, 128>}, {pipeline_mode = #tpu.pipeline_mode<synchronous>, transform_indices = @transform_1, window_bounds = array<i64: 128, 128>}, {pipeline_mode = #tpu.pipeline_mode<synchronous>, transform_indices = @transform_2, window_bounds = array<i64: 1, 128>}, {pipeline_mode = #tpu.pipeline_mode<synchronous>, transform_indices = @transform_3, window_bounds = array<i64: 128, 128>}, {pipeline_mode = #tpu.pipeline_mode<synchronous>, transform_indices = @transform_4, window_bounds = array<i64: 1, 128>}, {pipeline_mode = #tpu.pipeline_mode<synchronous>, transform_indices = @transform_5, window_bounds = array<i64: 128, 128>}, {pipeline_mode = #tpu.pipeline_mode<synchronous>, transform_indices = @transform_6, window_bounds = array<i64: 1, 128>}, {transform_indices = @transform_7, window_bounds = array<i64: 16, 128>}]} {
    %c0 = arith.constant 0 : index
    %c0_0 = arith.constant 0 : index
    %0 = vector.load %arg1[%c0, %c0_0] : memref<16x128xbf16, #tpu.memory_space<vmem>>, vector<16x128xbf16>
    %c0_1 = arith.constant 0 : index
    %c0_2 = arith.constant 0 : index
    %1 = vector.load %arg2[%c0_1, %c0_2] : memref<128x128xbf16, #tpu.memory_space<vmem>>, vector<128x128xbf16>
    %cst = arith.constant dense<0.000000e+00> : vector<16x128xf32>
    %2 = tpu.matmul %0, %1, %cst {dimension_numbers = #tpu.dot_dimension_numbers<[1], [0], [0], [1], [0, 0, 1, 1], [], []>} : vector<16x128xbf16>, vector<128x128xbf16>, vector<16x128xf32> -> vector<16x128xf32>
    %c0_3 = arith.constant 0 : index
    %c0_4 = arith.constant 0 : index
    %3 = vector.load %arg3[%c0_3, %c0_4] : memref<1x128xf32, #tpu.memory_space<vmem>>, vector<1x128xf32>
    %4 = vector.broadcast %3 : vector<1x128xf32> to vector<16x128xf32>
    %5 = arith.addf %2, %4 : vector<16x128xf32>
    %cst_5 = arith.constant 0.000000e+00 : f32
    %6 = vector.broadcast %cst_5 : f32 to vector<16x128xf32>
    %7 = arith.maximumf %5, %6 : vector<16x128xf32>
    %8 = arith.truncf %7 : vector<16x128xf32> to vector<16x128xbf16>
    %c0_6 = arith.constant 0 : index
    %c0_7 = arith.constant 0 : index
    %9 = vector.load %arg4[%c0_6, %c0_7] : memref<128x128xbf16, #tpu.memory_space<vmem>>, vector<128x128xbf16>
    %cst_8 = arith.constant dense<0.000000e+00> : vector<16x128xf32>
    %10 = tpu.matmul %8, %9, %cst_8 {dimension_numbers = #tpu.dot_dimension_numbers<[1], [0], [0], [1], [0, 0, 1, 1], [], []>} : vector<16x128xbf16>, vector<128x128xbf16>, vector<16x128xf32> -> vector<16x128xf32>
    %c0_9 = arith.constant 0 : index
    %c0_10 = arith.constant 0 : index
    %11 = vector.load %arg5[%c0_9, %c0_10] : memref<1x128xf32, #tpu.memory_space<vmem>>, vector<1x128xf32>
    %12 = vector.broadcast %11 : vector<1x128xf32> to vector<16x128xf32>
    %13 = arith.addf %10, %12 : vector<16x128xf32>
    %cst_11 = arith.constant 0.000000e+00 : f32
    %14 = vector.broadcast %cst_11 : f32 to vector<16x128xf32>
    %15 = arith.maximumf %13, %14 : vector<16x128xf32>
    %16 = arith.truncf %15 : vector<16x128xf32> to vector<16x128xbf16>
    %c0_12 = arith.constant 0 : index
    %c0_13 = arith.constant 0 : index
    %17 = vector.load %arg6[%c0_12, %c0_13] : memref<128x128xbf16, #tpu.memory_space<vmem>>, vector<128x128xbf16>
    %cst_14 = arith.constant dense<0.000000e+00> : vector<16x128xf32>
    %18 = tpu.matmul %16, %17, %cst_14 {dimension_numbers = #tpu.dot_dimension_numbers<[1], [0], [0], [1], [0, 0, 1, 1], [], []>} : vector<16x128xbf16>, vector<128x128xbf16>, vector<16x128xf32> -> vector<16x128xf32>
    %c0_15 = arith.constant 0 : index
    %c0_16 = arith.constant 0 : index
    %19 = vector.load %arg7[%c0_15, %c0_16] : memref<1x128xf32, #tpu.memory_space<vmem>>, vector<1x128xf32>
    %20 = vector.broadcast %19 : vector<1x128xf32> to vector<16x128xf32>
    %21 = arith.addf %18, %20 : vector<16x128xf32>
    %cst_17 = arith.constant dense<0xFF800000> : vector<16xf32>
    %22 = vector.multi_reduction <maximumf>, %21, %cst_17 [1] : vector<16x128xf32> to vector<16xf32>
    %23 = vector.shape_cast %22 : vector<16xf32> to vector<16x1xf32>
    %24 = vector.broadcast %23 : vector<16x1xf32> to vector<16x128xf32>
    %25 = arith.subf %21, %24 : vector<16x128xf32>
    %26 = math.exp %25 : vector<16x128xf32>
    %cst_18 = arith.constant dense<0.000000e+00> : vector<16xf32>
    %27 = vector.multi_reduction <add>, %26, %cst_18 [1] : vector<16x128xf32> to vector<16xf32>
    %28 = vector.shape_cast %27 : vector<16xf32> to vector<16x1xf32>
    %29 = tpu.reciprocal %28 {approx = true} : vector<16x1xf32> -> vector<16x1xf32>
    %30 = vector.broadcast %29 : vector<16x1xf32> to vector<16x128xf32>
    %31 = arith.mulf %26, %30 : vector<16x128xf32>
    %c0_19 = arith.constant 0 : index
    %c0_20 = arith.constant 0 : index
    %32 = vector.load %arg8[%c0_19, %c0_20] : memref<16x128xf32, #tpu.memory_space<vmem>>, vector<16x128xf32>
    tpu.vector_store %arg8[%c0_19, %c0_20], %31 {strides = array<i32>} : memref<16x128xf32, #tpu.memory_space<vmem>>, vector<16x128xf32>,
    return
  }
  func.func @transform_0(%arg0: i32) -> (i32, i32) {
    %c0_i32 = arith.constant 0 : i32
    %c0_i32_0 = arith.constant 0 : i32
    return %arg0, %c0_i32 : i32, i32
  }
  func.func @transform_1(%arg0: i32) -> (i32, i32) {
    %c0_i32 = arith.constant 0 : i32
    %c0_i32_0 = arith.constant 0 : i32
    %c0_i32_1 = arith.constant 0 : i32
    return %c0_i32, %c0_i32_0 : i32, i32
  }
  func.func @transform_2(%arg0: i32) -> (i32, i32) {
    %c0_i32 = arith.constant 0 : i32
    %c0_i32_0 = arith.constant 0 : i32
    %c0_i32_1 = arith.constant 0 : i32
    return %c0_i32, %c0_i32_0 : i32, i32
  }
  func.func @transform_3(%arg0: i32) -> (i32, i32) {
    %c0_i32 = arith.constant 0 : i32
    %c0_i32_0 = arith.constant 0 : i32
    %c0_i32_1 = arith.constant 0 : i32
    return %c0_i32, %c0_i32_0 : i32, i32
  }
  func.func @transform_4(%arg0: i32) -> (i32, i32) {
    %c0_i32 = arith.constant 0 : i32
    %c0_i32_0 = arith.constant 0 : i32
    %c0_i32_1 = arith.constant 0 : i32
    return %c0_i32, %c0_i32_0 : i32, i32
  }
  func.func @transform_5(%arg0: i32) -> (i32, i32) {
    %c0_i32 = arith.constant 0 : i32
    %c0_i32_0 = arith.constant 0 : i32
    %c0_i32_1 = arith.constant 0 : i32
    return %c0_i32, %c0_i32_0 : i32, i32
  }
  func.func @transform_6(%arg0: i32) -> (i32, i32) {
    %c0_i32 = arith.constant 0 : i32
    %c0_i32_0 = arith.constant 0 : i32
    %c0_i32_1 = arith.constant 0 : i32
    return %c0_i32, %c0_i32_0 : i32, i32
  }
  func.func @transform_7(%arg0: i32) -> (i32, i32) {
    %c0_i32 = arith.constant 0 : i32
    %c0_i32_0 = arith.constant 0 : i32
    return %arg0, %c0_i32 : i32, i32
  }
}

</mosaic_0001>

<bundles_post_ra>
// kernel: pinn_forward.1
= control target key start
LH: loop header
LB: loop body
LE: loop exit
PB: predicated region body
PF: predicated region fallthrough
CT: control target
= control target key end

     0   :  { %v551_v0 = vmov 0.0   ;;  %vm552_vm0 = vmmov 0   ;;  %s713_s1 = inlined_call_operand.vmem [shape: bf16[128,128], index: 1, kind: input, shape index: {}]   ;;  %s714_s3 = inlined_call_operand.vmem [shape: bf16[128,128], index: 3, kind: input, shape index: {}]   ;;  %s715_s0 = inlined_call_operand.vmem [shape: bf16[16,128], index: 0, kind: input, shape index: {}]   ;;  %s716_s5 = inlined_call_operand.vmem [shape: bf16[128,128], index: 5, kind: input, shape index: {}]   ;;  %s717_s2 = inlined_call_operand.vmem [shape: f32[1,128], index: 2, kind: input, shape index: {}]   ;;  %s718_s4 = inlined_call_operand.vmem [shape: f32[1,128], index: 4, kind: input, shape index: {}]   ;;  %s719_s6 = inlined_call_operand.vmem [shape: f32[1,128], index: 6, kind: input, shape index: {}]   ;;  %s720_s7 = inlined_call_operand.vmem [shape: f32[16,128], index: 7, kind: output, shape index: {}]  }
   0x1   :  { %456 = vmatprep.subr.bf16.mxu0 %v551_v0  ;;  %v518_v1 = vld [vmem:[%s713_s1 + $0x38] sm:$0xff]   ;;  %472 = vmatprep.mubr.msk.bf16.mxu0 %vm552_vm0, %v551_v0  ;;  %v519_v2 = vld [vmem:[%s713_s1 + $0x30] sm:$0xff]   ;;  %v520_v3 = vld [vmem:[%s713_s1 + $0x28] sm:$0xff]  }
   0x2   :  { %476 = vmatprep.subr.bf16.mxu1 %v551_v0  ;;  %492 = vmatprep.mubr.msk.bf16.mxu1 %vm552_vm0, %v551_v0  ;;  %v527_v4 = vld [vmem:[%s714_s3 + $0x38] sm:$0xff]   ;;  %v521_v5 = vld [vmem:[%s713_s1 + $0x20] sm:$0xff]   ;;  %v528_v6 = vld [vmem:[%s714_s3 + $0x30] sm:$0xff]  }
   0x3   :  { %457 = vmatpush3.bf16.msra.mxu0 %v518_v1  ;;  %477 = vmatpush3.bf16.msra.mxu1 %v527_v4  ;;  %v522_v7 = vld [vmem:[%s713_s1 + $0x18] sm:$0xff]   ;;  %v529_v8 = vld [vmem:[%s714_s3 + $0x28] sm:$0xff]   ;;  %v523_v9 = vld [vmem:[%s713_s1 + $0x10] sm:$0xff]  }
   0x4   :  { %458 = vmatprep.subr.bf16.mxu0 %v551_v0  ;;  %478 = vmatprep.subr.bf16.mxu1 %v551_v0  ;;  %v530_v10 = vld [vmem:[%s714_s3 + $0x20] sm:$0xff]   ;;  %v524_v11 = vld [vmem:[%s713_s1 + $0x8] sm:$0xff]   ;;  %v531_v12 = vld [vmem:[%s714_s3 + $0x18] sm:$0xff]  }
   0x5   :  { %v525_v13 = vld [vmem:[%s713_s1] sm:$0xff]   ;;  %v532_v15 = vld [vmem:[%s714_s3 + $0x10] sm:$0xff]   ;;  %v533_v16 = vld [vmem:[%s714_s3 + $0x8] sm:$0xff]  }
   0x6   :  { %v526_v14 = vld [vmem:[%s715_s0] sm:$0xff]   ;;  %v535_v18 = vld [vmem:[%s716_s5 + $0x38] sm:$0xff]   ;;  %v536_v19 = vld [vmem:[%s716_s5 + $0x30] sm:$0xff]  }
   0x7   :  { %459 = vmatpush3.bf16.msra.mxu0 %v519_v2  ;;  %479 = vmatpush3.bf16.msra.mxu1 %v528_v6  ;;  %v534_v17 = vld [vmem:[%s714_s3] sm:$0xff]   ;;  %v537_v20 = vld [vmem:[%s716_s5 + $0x28] sm:$0xff]   ;;  %v539_v22 = vld [vmem:[%s716_s5 + $0x18] sm:$0xff]  }
   0x8   :  { %460 = vmatprep.subr.bf16.mxu0 %v551_v0  ;;  %480 = vmatprep.subr.bf16.mxu1 %v551_v0  ;;  %v538_v21 = vld [vmem:[%s716_s5 + $0x20] sm:$0xff]   ;;  %v540_v33 = vld [vmem:[%s716_s5 + $0x10] sm:$0xff]   ;;  %v541_v34 = vld [vmem:[%s716_s5 + $0x8] sm:$0xff]  }
   0x9   :  { %v401_v23 = vld [vmem:[%s717_s2] ss:$0 sm:$0xff] }
   0xa   :  { %v542_v35 = vld [vmem:[%s716_s5] sm:$0xff]  }
   0xb   :  { %461 = vmatpush3.bf16.msra.mxu0 %v520_v3  ;;  %481 = vmatpush3.bf16.msra.mxu1 %v529_v8  ;;  %v411_v36 = vld [vmem:[%s718_s4] ss:$0 sm:$0xff] }
   0xc   :  { %462 = vmatprep.subr.bf16.mxu0 %v551_v0  ;;  %482 = vmatprep.subr.bf16.mxu1 %v551_v0  ;;  %v420_v46 = vld [vmem:[%s719_s6] ss:$0 sm:$0xff] }
   0xf   :  { %463 = vmatpush3.bf16.msra.mxu0 %v521_v5  ;;  %483 = vmatpush3.bf16.msra.mxu1 %v530_v10 }
  0x10   :  { %464 = vmatprep.subr.bf16.mxu0 %v551_v0  ;;  %484 = vmatprep.subr.bf16.mxu1 %v551_v0 }
  0x13   :  { %465 = vmatpush3.bf16.msra.mxu0 %v522_v7  ;;  %485 = vmatpush3.bf16.msra.mxu1 %v531_v12 }
  0x14   :  { %466 = vmatprep.subr.bf16.mxu0 %v551_v0  ;;  %486 = vmatprep.subr.bf16.mxu1 %v551_v0 }
  0x17   :  { %467 = vmatpush3.bf16.msra.mxu0 %v523_v9  ;;  %487 = vmatpush3.bf16.msra.mxu1 %v532_v15 }
  0x18   :  { %468 = vmatprep.subr.bf16.mxu0 %v551_v0  ;;  %488 = vmatprep.subr.bf16.mxu1 %v551_v0 }
  0x1b   :  { %469 = vmatpush3.bf16.msra.mxu0 %v524_v11  ;;  %489 = vmatpush3.bf16.msra.mxu1 %v533_v16 }
  0x1c   :  { %470 = vmatprep.subr.bf16.mxu0 %v551_v0  ;;  %490 = vmatprep.subr.bf16.mxu1 %v551_v0 }
  0x1f   :  { %471 = vmatpush3.bf16.msra.mxu0 %v525_v13  ;;  %491 = vmatpush3.bf16.msra.mxu1 %v534_v17 }
  0x20   :  { %496 = vmatprep.subr.bf16.mxu0 %v551_v0 }
  0x22   :  { %473 = vmatmul.mubr.bf16.vlgmr.msra.gmra.mxu0 %v526_v14 }
  0x23   :  { %512 = vmatprep.mubr.msk.bf16.mxu0 %vm552_vm0, %v551_v0  ;;  %497 = vmatpush3.bf16.msra.mxu0 %v535_v18 }
  0x24   :  { %498 = vmatprep.subr.bf16.mxu0 %v551_v0 }
  0x27   :  { %499 = vmatpush3.bf16.msra.mxu0 %v536_v19 }
  0x28   :  { %500 = vmatprep.subr.bf16.mxu0 %v551_v0 }
  0x2b   :  { %501 = vmatpush3.bf16.msra.mxu0 %v537_v20 }
  0x2c   :  { %502 = vmatprep.subr.bf16.mxu0 %v551_v0 }
  0x2f   :  { %503 = vmatpush3.bf16.msra.mxu0 %v538_v21 }
  0x30   :  { %504 = vmatprep.subr.bf16.mxu0 %v551_v0 }
  0x33   :  { %505 = vmatpush3.bf16.msra.mxu0 %v539_v22 }
  0x34   :  { %506 = vmatprep.subr.bf16.mxu0 %v551_v0 }
  0x37   :  { %507 = vmatpush3.bf16.msra.mxu0 %v540_v33 }
  0x38   :  { %508 = vmatprep.subr.bf16.mxu0 %v551_v0 }
  0x3b   :  { %509 = vmatpush3.bf16.msra.mxu0 %v541_v34 }
  0x3c   :  { %510 = vmatprep.subr.bf16.mxu0 %v551_v0 }
  0x3f   :  { %511 = vmatpush3.bf16.msra.mxu0 %v542_v35 }
  0xe2   :  { %v140_v24 = vpop.f32.mrf.mxu0 }
  0xe3   :  { %v141_v26 = vadd.f32 %v401_v23, %v140_v24 }
  0xe4   :  { %v474_v25 = vpop.f32.mrf.mxu0 }
  0xe5   :  { %v147_v30 = vmax.f32 %v141_v26, 0.0 }
  0xe6   :  { %v143_v27 = vpop.f32.mrf.mxu0 }
  0xe7   :  { %v144_v28 = vadd.f32 %v401_v23, %v143_v27 }
  0xe8   :  { %v475_v29 = vpop.f32.mrf.mxu0 }
  0xe9   :  { %v148_v31 = vmax.f32 %v144_v28, 0.0 }
  0xeb   :  { %v149_v32 = vpack.c.bf16 %v148_v31, %v147_v30 }
  0xed   :  { %493 = vmatmul.mubr.bf16.vlgmr.msra.gmra.mxu1 %v149_v32 }
 0x1ad   :  { %v255_v37 = vpop.f32.mrf.mxu1 }
 0x1ae   :  { %v256_v39 = vadd.f32 %v411_v36, %v255_v37 }
 0x1af   :  { %v494_v38 = vpop.f32.mrf.mxu1 }
 0x1b0   :  { %v262_v43 = vmax.f32 %v256_v39, 0.0 }
 0x1b1   :  { %v258_v40 = vpop.f32.mrf.mxu1 }
 0x1b2   :  { %v259_v41 = vadd.f32 %v411_v36, %v258_v40 }
 0x1b3   :  { %v495_v42 = vpop.f32.mrf.mxu1 }
 0x1b4   :  { %v263_v44 = vmax.f32 %v259_v41, 0.0 }
 0x1b6   :  { %v264_v45 = vpack.c.bf16 %v263_v44, %v262_v43 }
 0x1b8   :  { %513 = vmatmul.mubr.bf16.vlgmr.msra.gmra.mxu0 %v264_v45 }
 0x278   :  { %v370_v47 = vpop.f32.mrf.mxu0 }
 0x279   :  { %v371_v48 = vadd.f32 %v420_v46, %v370_v47 }
 0x27a   :  { %v514_v49 = vpop.f32.mrf.mxu0 }
 0x27b   :  { %377 = vmax.xlane.f32.xlu0 %v371_v48 }
 0x27c   :  { %v373_v50 = vpop.f32.mrf.mxu0 }
 0x27d   :  { %v374_v51 = vadd.f32 %v420_v46, %v373_v50 }
 0x27e   :  { %v515_v52 = vpop.f32.mrf.mxu0 }
 0x27f   :  { %379 = vmax.xlane.f32.xlu0 %v374_v51 }
 0x304   :  { %v378_v53 = vpop.xlane.xlu0 %377 }
 0x305   :  { %v381_v54 = vsub.f32 %v371_v48, %v378_v53 }
 0x307   :  { %v383_v55 = vmul.f32 1.442695, %v381_v54 }
 0x308   :  { %v380_v56 = vpop.xlane.xlu0 %379 }
 0x309   :  { %543 = vpow2.f32 %v383_v55  ;;  %v382_v57 = vsub.f32 %v374_v51, %v380_v56 }
 0x30b   :  { %v385_v58 = vmul.f32 1.442695, %v382_v57 }
 0x30d   :  { %545 = vpow2.f32 %v385_v58 }
 0x316   :  { %v544_v59 = vpop.eup %543 }
 0x317   :  { %387 = vadd.xlane.f32.xlu1 %v544_v59 }
 0x31a   :  { %v546_v60 = vpop.eup %545 }
 0x31b   :  { %389 = vadd.xlane.f32.xlu1 %v546_v60 }
 0x3a0   :  { %v388_v61 = vpop.xlane.xlu1 %387 }
 0x3a1   :  { %547 = vrcp.f32 %v388_v61 }
 0x3a4   :  { %v390_v62 = vpop.xlane.xlu1 %389 }
 0x3a5   :  { %549 = vrcp.f32 %v390_v62 }
 0x3ae   :  { %v548_v63 = vpop.eup %547 }
 0x3af   :  { %v393_v0 = vmul.f32 %v548_v63, %v544_v59 }
 0x3b1   :  { %395 = vst [vmem:[%s720_s7] sm:$0xff] %v393_v0 }
 0x3b2   :  { %v550_v1 = vpop.eup %549 }
 0x3b3   :  { %v394_v2 = vmul.f32 %v550_v1, %v546_v60 }
 0x3b5   :  { %396 = vst [vmem:[%s720_s7 + $0x8] sm:$0xff] %v394_v2 }

</bundles_post_ra>
